<compile_context>
chip_gen: v7x
topology: tpu7x:2x2x1
jax: 0.10.0
libtpu: 0.0.40
codegen_flags: <defaults>
</compile_context>

<pallas_src>
import functools

import jax
import jax.numpy as jnp
from jax.experimental import pallas as pl
from jax.experimental.pallas import tpu as pltpu

_LANES = 128


def _tversky_sums_kernel(x_ref, t_ref, sp_ref, st_ref, tp_ref, *, n_classes):
    """One grid step over a dense (R, 128) voxel slab.

    x_ref  : (C, R, 128) logits (f32 or bf16)
    t_ref  : (R, 128)    integer labels (int8 or int32)
    sp_ref : (C, 128) f32  per-class sum(p)            (lane-dense partials)
    st_ref : (C, 128) f32  per-class sum(one_hot)
    tp_ref : (C, 128) f32  per-class sum(p * one_hot)
    Accumulators are resident across the inner (arbitrary) grid axis.
    """
    @pl.when(pl.program_id(2) == 0)
    def _init():
        sp_ref[...] = jnp.zeros_like(sp_ref)
        st_ref[...] = jnp.zeros_like(st_ref)
        tp_ref[...] = jnp.zeros_like(tp_ref)

    labels = t_ref[...].astype(jnp.int32)                       # (R, 128)

    # Unrolled C-way softmax over dense (R, 128) slabs == F.softmax(inputs, dim=1).
    xs = [x_ref[c].astype(jnp.float32) for c in range(n_classes)]
    m = xs[0]
    for c in range(1, n_classes):
        m = jnp.maximum(m, xs[c])
    es = [jnp.exp(xs[c] - m) for c in range(n_classes)]
    denom = es[0]
    for c in range(1, n_classes):
        denom = denom + es[c]
    inv = 1.0 / denom                                           # exact divide (torch parity)

    sp_rows, st_rows, tp_rows = [], [], []
    for c in range(n_classes):
        p_c = es[c] * inv                                       # (R, 128) prob of class c
        is_c = labels == c                                      # on-the-fly one-hot, no f32 cast
        sp_rows.append(jnp.sum(p_c, axis=0, keepdims=True))                      # (1, 128)
        st_rows.append(jnp.sum(is_c.astype(jnp.float32), axis=0, keepdims=True))
        tp_rows.append(jnp.sum(jnp.where(is_c, p_c, 0.0), axis=0, keepdims=True))

    sp_ref[...] += jnp.concatenate(sp_rows, axis=0)             # (C, 128) lane-dense partials
    st_ref[...] += jnp.concatenate(st_rows, axis=0)
    tp_ref[...] += jnp.concatenate(tp_rows, axis=0)


def _pick_row_tiling(rows, target_rows, want_outer):
    """Choose (rows_per_tile R, padded_rows, n_outer, n_inner).

    Prefers an R that (a) is a multiple of 32 (int8-label friendly; 8 also ok),
    (b) divides the row count exactly (no ragged blocks, no wrapper padding),
    and (c) gives a block count divisible by `want_outer` so the outer axis can
    shard across TensorCores.  Falls back to padding the row axis.
    """
    if rows <= 8:
        return rows, rows, 1, 1                                 # single full-extent block
    cap = min(target_rows, rows)
    fallback = None
    for gran in (32, 8):
        r = (cap // gran) * gran
        while r >= gran:
            if rows % r == 0:
                nb = rows // r
                if want_outer > 1 and nb >= want_outer and nb % want_outer == 0:
                    return r, rows, want_outer, nb // want_outer
                if fallback is None:
                    fallback = (r, rows, 1, nb)
            r -= gran
        if fallback is not None:
            return fallback
    # No aligned divisor: pad the row axis up to a whole number of tiles.
    r = max(8, (cap // 8) * 8)
    nb = -(-rows // r)
    if want_outer > 1 and nb >= want_outer:
        nb = -(-nb // want_outer) * want_outer
        return r, nb * r, want_outer, nb // want_outer
    return r, nb * r, 1, nb


def multi_tversky_loss(inputs, target, n_classes=3, eps=1.0, alpha=0.7, beta=0.3,
                       tile_voxels=128 * 1024, outer_chunks=2):
    """inputs: (B, C, D, H, W) float logits; target: (B, D, H, W) int labels."""
    b, c, d, h, w = inputs.shape
    assert c == n_classes
    dhw = d * h * w

    rows0 = -(-dhw // _LANES)
    target_rows = max(8, tile_voxels // _LANES)
    r_tile, rows, n_outer, n_inner = _pick_row_tiling(rows0, target_rows, outer_chunks)

    # Contiguous reshapes only; the pad (one extra HBM copy) fires only when dhw
    # does not already fit the chosen (rows, 128) layout exactly.
    x = inputs.reshape(b, c, dhw)
    labels = target.reshape(b, dhw)
    if labels.dtype not in (jnp.dtype(jnp.int8), jnp.dtype(jnp.int32)):
        labels = labels.astype(jnp.int32)
    pad_n = rows * _LANES - dhw
    if pad_n:
        # Zero logits -> softmax == 1/C exactly; label == n_classes matches no
        # class.  Only SP is contaminated and that is removed exactly below,
        # so the kernel itself needs no mask ops on any tile.
        x = jnp.pad(x, ((0, 0), (0, 0), (0, pad_n)))
        labels = jnp.pad(labels, ((0, 0), (0, pad_n)), constant_values=n_classes)
    x = x.reshape(b, c, rows, _LANES)
    labels = labels.reshape(b, rows, _LANES)

    kernel = functools.partial(_tversky_sums_kernel, n_classes=n_classes)
    acc_shape = jax.ShapeDtypeStruct((b, n_outer, n_classes, _LANES), jnp.float32)

    sp, st, tp = pl.pallas_call(
        kernel,
        out_shape=(acc_shape, acc_shape, acc_shape),
        grid_spec=pltpu.PrefetchScalarGridSpec(
            num_scalar_prefetch=0,
            grid=(b, n_outer, n_inner),
            in_specs=[
                pl.BlockSpec((None, n_classes, r_tile, _LANES),
                             lambda bi, oi, j: (bi, 0, oi * n_inner + j, 0)),
                pl.BlockSpec((None, r_tile, _LANES),
                             lambda bi, oi, j: (bi, oi * n_inner + j, 0)),
            ],
            out_specs=[
                pl.BlockSpec((None, None, n_classes, _LANES),
                             lambda bi, oi, j: (bi, oi, 0, 0))
                for _ in range(3)
            ],
        ),
        compiler_params=pltpu.CompilerParams(
            dimension_semantics=("parallel", "parallel", "arbitrary"),
            vmem_limit_bytes=32 * 1024 * 1024,
        ),
    )(x, labels)

    # O(C) epilogue: fold batch / outer-chunk / lane partials, derive FP & FN.
    SP = jnp.sum(sp, axis=(0, 1, 3))                            # sum(p)        per class
    ST = jnp.sum(st, axis=(0, 1, 3))                            # sum(one_hot)  per class
    TP = jnp.sum(tp, axis=(0, 1, 3))                            # sum(p * t)    per class
    if pad_n:
        SP = SP - jnp.float32(b * pad_n) * (jnp.float32(1.0) / jnp.float32(n_classes))
    FP = SP - TP                                                # sum((1 - t) * p)
    FN = ST - TP                                                # sum(t * (1 - p))

    tversky = (TP + eps) / (TP + alpha * FP + beta * FN + eps)
    score = 1.0 - tversky / (float(b) * float(n_classes))       # matches the PyTorch module
    return jnp.mean(score)


def _reference(inputs, target, n_classes=3, eps=1.0, alpha=0.7, beta=0.3):
    """Pure-JAX mirror of the PyTorch forward, for verification."""
    b = inputs.shape[0]
    p = jax.nn.softmax(inputs.astype(jnp.float32), axis=1)
    t = jnp.moveaxis(jax.nn.one_hot(target, n_classes, dtype=p.dtype), -1, 1)
    TP = jnp.sum(p * t, axis=(0, 2, 3, 4))
    FP = jnp.sum((1.0 - t) * p, axis=(0, 2, 3, 4))
    FN = jnp.sum(t * (1.0 - p), axis=(0, 2, 3, 4))
    tversky = (TP + eps) / (TP + alpha * FP + beta * FN + eps)
    score = 1.0 - tversky / (float(b) * float(n_classes))
    return jnp.mean(score)


if __name__ == "__main__":
    key = jax.random.PRNGKey(0)
    k1, k2, k3, k4, k5, k6 = jax.random.split(key, 6)

    # Case 1: aligned shape (dhw = 512), int8 labels, single full-extent block.
    B, C, D, H, W = 2, 3, 8, 8, 8
    x1 = jax.random.normal(k1, (B, C, D, H, W), dtype=jnp.float32)
    t1 = jax.random.randint(k2, (B, D, H, W), 0, C, dtype=jnp.int32).astype(jnp.int8)
    out1 = jax.block_until_ready(multi_tversky_loss(x1, t1, n_classes=C))
    ref1 = _reference(x1, t1, n_classes=C)
    assert jnp.allclose(out1, ref1, rtol=1e-4, atol=1e-4), (out1, ref1)

    # Case 2: unaligned shape (dhw = 315) exercising the zero-pad + exact SP correction path.
    x2 = jax.random.normal(k3, (1, C, 5, 7, 9), dtype=jnp.float32)
    t2 = jax.random.randint(k4, (1, 5, 7, 9), 0, C, dtype=jnp.int32).astype(jnp.int8)
    out2 = jax.block_until_ready(multi_tversky_loss(x2, t2, n_classes=C))
    ref2 = _reference(x2, t2, n_classes=C)
    assert jnp.allclose(out2, ref2, rtol=1e-4, atol=1e-4), (out2, ref2)

    # Case 3: multi-tile path (small tile_voxels forces n_outer=2, n_inner=4), int32 labels.
    x3 = jax.random.normal(k5, (2, C, 16, 16, 32), dtype=jnp.float32)
    t3 = jax.random.randint(k6, (2, 16, 16, 32), 0, C, dtype=jnp.int32)
    out3 = jax.block_until_ready(
        multi_tversky_loss(x3, t3, n_classes=C, tile_voxels=8 * 128))
    ref3 = _reference(x3, t3, n_classes=C)
    assert jnp.allclose(out3, ref3, rtol=1e-4, atol=1e-4), (out3, ref3)

    print("KERNEL_OK")
</pallas_src>

<mosaic_0001>
module attributes {stable_mosaic.version = 11 : i64} {
  func.func @_tversky_sums_kernel(%arg0: i32, %arg1: i32, %arg2: i32, %arg3: memref<1x3x4x128xf32, #tpu.memory_space<vmem>>, %arg4: memref<1x4x128xi8, #tpu.memory_space<vmem>>, %arg5: memref<1x1x3x128xf32, #tpu.memory_space<vmem>>, %arg6: memref<1x1x3x128xf32, #tpu.memory_space<vmem>>, %arg7: memref<1x1x3x128xf32, #tpu.memory_space<vmem>>) attributes {dimension_semantics = [#tpu.dimension_semantics<parallel>, #tpu.dimension_semantics<parallel>, #tpu.dimension_semantics<arbitrary>], iteration_bounds = array<i64: 2, 1, 1>, scalar_prefetch = 0 : i64, scratch_operands = 0 : i64, tpu.core_type = #tpu.core_type<tc>, window_params = [{transform_indices = @transform_0, window_bounds = array<i64: 1, 3, 4, 128>}, {transform_indices = @transform_1, window_bounds = array<i64: 1, 4, 128>}, {transform_indices = @transform_2, window_bounds = array<i64: 1, 1, 3, 128>}, {transform_indices = @transform_3, window_bounds = array<i64: 1, 1, 3, 128>}, {transform_indices = @transform_4, window_bounds = array<i64: 1, 1, 3, 128>}]} {
    %c0_i32 = arith.constant 0 : i32
    %0 = arith.cmpi eq, %arg2, %c0_i32 : i32
    %1 = arith.extui %0 : i1 to i32
    %c0_i32_0 = arith.constant 0 : i32
    %2 = arith.cmpi ne, %1, %c0_i32_0 : i32
    scf.if %2 {
      %cst_50 = arith.constant 0.000000e+00 : f32
      %84 = vector.broadcast %cst_50 : f32 to vector<3x128xf32>
      %c0_51 = arith.constant 0 : index
      %c0_52 = arith.constant 0 : index
      %c0_53 = arith.constant 0 : index
      %c0_54 = arith.constant 0 : index
      %85 = vector.load %arg5[%c0_51, %c0_52, %c0_53, %c0_54] : memref<1x1x3x128xf32, #tpu.memory_space<vmem>>, vector<1x1x3x128xf32>
      %86 = vector.shape_cast %85 : vector<1x1x3x128xf32> to vector<3x128xf32>
      %87 = vector.shape_cast %84 : vector<3x128xf32> to vector<1x1x3x128xf32>
      tpu.vector_store %arg5[%c0_51, %c0_52, %c0_53, %c0_54], %87 {strides = array<i32>} : memref<1x1x3x128xf32, #tpu.memory_space<vmem>>, vector<1x1x3x128xf32>,
      %cst_55 = arith.constant 0.000000e+00 : f32
      %88 = vector.broadcast %cst_55 : f32 to vector<3x128xf32>
      %c0_56 = arith.constant 0 : index
      %c0_57 = arith.constant 0 : index
      %c0_58 = arith.constant 0 : index
      %c0_59 = arith.constant 0 : index
      %89 = vector.load %arg6[%c0_56, %c0_57, %c0_58, %c0_59] : memref<1x1x3x128xf32, #tpu.memory_space<vmem>>, vector<1x1x3x128xf32>
      %90 = vector.shape_cast %89 : vector<1x1x3x128xf32> to vector<3x128xf32>
      %91 = vector.shape_cast %88 : vector<3x128xf32> to vector<1x1x3x128xf32>
      tpu.vector_store %arg6[%c0_56, %c0_57, %c0_58, %c0_59], %91 {strides = array<i32>} : memref<1x1x3x128xf32, #tpu.memory_space<vmem>>, vector<1x1x3x128xf32>,
      %cst_60 = arith.constant 0.000000e+00 : f32
      %92 = vector.broadcast %cst_60 : f32 to vector<3x128xf32>
      %c0_61 = arith.constant 0 : index
      %c0_62 = arith.constant 0 : index
      %c0_63 = arith.constant 0 : index
      %c0_64 = arith.constant 0 : index
      %93 = vector.load %arg7[%c0_61, %c0_62, %c0_63, %c0_64] : memref<1x1x3x128xf32, #tpu.memory_space<vmem>>, vector<1x1x3x128xf32>
      %94 = vector.shape_cast %93 : vector<1x1x3x128xf32> to vector<3x128xf32>
      %95 = vector.shape_cast %92 : vector<3x128xf32> to vector<1x1x3x128xf32>
      tpu.vector_store %arg7[%c0_61, %c0_62, %c0_63, %c0_64], %95 {strides = array<i32>} : memref<1x1x3x128xf32, #tpu.memory_space<vmem>>, vector<1x1x3x128xf32>,
    } else {
    }
    %c0 = arith.constant 0 : index
    %c0_1 = arith.constant 0 : index
    %c0_2 = arith.constant 0 : index
    %3 = vector.load %arg4[%c0, %c0_1, %c0_2] : memref<1x4x128xi8, #tpu.memory_space<vmem>>, vector<1x4x128xi8>
    %4 = vector.shape_cast %3 : vector<1x4x128xi8> to vector<4x128xi8>
    %5 = arith.extsi %4 : vector<4x128xi8> to vector<4x128xi32>
    %c0_3 = arith.constant 0 : index
    %c0_4 = arith.constant 0 : index
    %c0_5 = arith.constant 0 : index
    %c0_6 = arith.constant 0 : index
    %6 = vector.load %arg3[%c0_3, %c0_4, %c0_5, %c0_6] : memref<1x3x4x128xf32, #tpu.memory_space<vmem>>, vector<1x1x4x128xf32>
    %7 = vector.shape_cast %6 : vector<1x1x4x128xf32> to vector<4x128xf32>
    %c0_7 = arith.constant 0 : index
    %c1 = arith.constant 1 : index
    %c0_8 = arith.constant 0 : index
    %c0_9 = arith.constant 0 : index
    %8 = vector.load %arg3[%c0_7, %c1, %c0_8, %c0_9] : memref<1x3x4x128xf32, #tpu.memory_space<vmem>>, vector<1x1x4x128xf32>
    %9 = vector.shape_cast %8 : vector<1x1x4x128xf32> to vector<4x128xf32>
    %c0_10 = arith.constant 0 : index
    %c2 = arith.constant 2 : index
    %c0_11 = arith.constant 0 : index
    %c0_12 = arith.constant 0 : index
    %10 = vector.load %arg3[%c0_10, %c2, %c0_11, %c0_12] : memref<1x3x4x128xf32, #tpu.memory_space<vmem>>, vector<1x1x4x128xf32>
    %11 = vector.shape_cast %10 : vector<1x1x4x128xf32> to vector<4x128xf32>
    %12 = arith.maximumf %7, %9 : vector<4x128xf32>
    %13 = arith.maximumf %12, %11 : vector<4x128xf32>
    %14 = arith.subf %7, %13 : vector<4x128xf32>
    %15 = math.exp %14 : vector<4x128xf32>
    %16 = arith.subf %9, %13 : vector<4x128xf32>
    %17 = math.exp %16 : vector<4x128xf32>
    %18 = arith.subf %11, %13 : vector<4x128xf32>
    %19 = math.exp %18 : vector<4x128xf32>
    %20 = arith.addf %15, %17 : vector<4x128xf32>
    %21 = arith.addf %20, %19 : vector<4x128xf32>
    %cst = arith.constant 1.000000e+00 : f32
    %22 = vector.broadcast %cst : f32 to vector<4x128xf32>
    %23 = arith.divf %22, %21 : vector<4x128xf32>
    %24 = arith.mulf %15, %23 : vector<4x128xf32>
    %c0_i32_13 = arith.constant 0 : i32
    %25 = vector.broadcast %c0_i32_13 : i32 to vector<4x128xi32>
    %26 = arith.cmpi eq, %5, %25 : vector<4x128xi32>
    %cst_14 = arith.constant dense<0.000000e+00> : vector<128xf32>
    %27 = vector.multi_reduction <add>, %24, %cst_14 [0] : vector<4x128xf32> to vector<128xf32>
    %28 = vector.shape_cast %27 : vector<128xf32> to vector<1x128xf32>
    %29 = arith.extui %26 : vector<4x128xi1> to vector<4x128xi32>
    %30 = arith.sitofp %29 : vector<4x128xi32> to vector<4x128xf32>
    %cst_15 = arith.constant dense<0.000000e+00> : vector<128xf32>
    %31 = vector.multi_reduction <add>, %30, %cst_15 [0] : vector<4x128xf32> to vector<128xf32>
    %32 = vector.shape_cast %31 : vector<128xf32> to vector<1x128xf32>
    %cst_16 = arith.constant 0.000000e+00 : f32
    %33 = vector.broadcast %cst_16 : f32 to vector<4x128xf32>
    %34 = arith.select %26, %24, %33 : vector<4x128xi1>, vector<4x128xf32>
    %cst_17 = arith.constant dense<0.000000e+00> : vector<128xf32>
    %35 = vector.multi_reduction <add>, %34, %cst_17 [0] : vector<4x128xf32> to vector<128xf32>
    %36 = vector.shape_cast %35 : vector<128xf32> to vector<1x128xf32>
    %37 = arith.mulf %17, %23 : vector<4x128xf32>
    %c1_i32 = arith.constant 1 : i32
    %38 = vector.broadcast %c1_i32 : i32 to vector<4x128xi32>
    %39 = arith.cmpi eq, %5, %38 : vector<4x128xi32>
    %cst_18 = arith.constant dense<0.000000e+00> : vector<128xf32>
    %40 = vector.multi_reduction <add>, %37, %cst_18 [0] : vector<4x128xf32> to vector<128xf32>
    %41 = vector.shape_cast %40 : vector<128xf32> to vector<1x128xf32>
    %42 = arith.extui %39 : vector<4x128xi1> to vector<4x128xi32>
    %43 = arith.sitofp %42 : vector<4x128xi32> to vector<4x128xf32>
    %cst_19 = arith.constant dense<0.000000e+00> : vector<128xf32>
    %44 = vector.multi_reduction <add>, %43, %cst_19 [0] : vector<4x128xf32> to vector<128xf32>
    %45 = vector.shape_cast %44 : vector<128xf32> to vector<1x128xf32>
    %cst_20 = arith.constant 0.000000e+00 : f32
    %46 = vector.broadcast %cst_20 : f32 to vector<4x128xf32>
    %47 = arith.select %39, %37, %46 : vector<4x128xi1>, vector<4x128xf32>
    %cst_21 = arith.constant dense<0.000000e+00> : vector<128xf32>
    %48 = vector.multi_reduction <add>, %47, %cst_21 [0] : vector<4x128xf32> to vector<128xf32>
    %49 = vector.shape_cast %48 : vector<128xf32> to vector<1x128xf32>
    %50 = arith.mulf %19, %23 : vector<4x128xf32>
    %c2_i32 = arith.constant 2 : i32
    %51 = vector.broadcast %c2_i32 : i32 to vector<4x128xi32>
    %52 = arith.cmpi eq, %5, %51 : vector<4x128xi32>
    %cst_22 = arith.constant dense<0.000000e+00> : vector<128xf32>
    %53 = vector.multi_reduction <add>, %50, %cst_22 [0] : vector<4x128xf32> to vector<128xf32>
    %54 = vector.shape_cast %53 : vector<128xf32> to vector<1x128xf32>
    %55 = arith.extui %52 : vector<4x128xi1> to vector<4x128xi32>
    %56 = arith.sitofp %55 : vector<4x128xi32> to vector<4x128xf32>
    %cst_23 = arith.constant dense<0.000000e+00> : vector<128xf32>
    %57 = vector.multi_reduction <add>, %56, %cst_23 [0] : vector<4x128xf32> to vector<128xf32>
    %58 = vector.shape_cast %57 : vector<128xf32> to vector<1x128xf32>
    %cst_24 = arith.constant 0.000000e+00 : f32
    %59 = vector.broadcast %cst_24 : f32 to vector<4x128xf32>
    %60 = arith.select %52, %50, %59 : vector<4x128xi1>, vector<4x128xf32>
    %cst_25 = arith.constant dense<0.000000e+00> : vector<128xf32>
    %61 = vector.multi_reduction <add>, %60, %cst_25 [0] : vector<4x128xf32> to vector<128xf32>
    %62 = vector.shape_cast %61 : vector<128xf32> to vector<1x128xf32>
    %c0_26 = arith.constant 0 : index
    %c0_27 = arith.constant 0 : index
    %c0_28 = arith.constant 0 : index
    %c0_29 = arith.constant 0 : index
    %63 = vector.load %arg5[%c0_26, %c0_27, %c0_28, %c0_29] : memref<1x1x3x128xf32, #tpu.memory_space<vmem>>, vector<1x1x3x128xf32>
    %64 = vector.shape_cast %63 : vector<1x1x3x128xf32> to vector<3x128xf32>
    %65 = tpu.concatenate %28, %41, %54 in 0 : vector<1x128xf32>, vector<1x128xf32>, vector<1x128xf32> -> vector<3x128xf32>
    %66 = arith.addf %64, %65 : vector<3x128xf32>
    %c0_30 = arith.constant 0 : index
    %c0_31 = arith.constant 0 : index
    %c0_32 = arith.constant 0 : index
    %c0_33 = arith.constant 0 : index
    %67 = vector.load %arg5[%c0_30, %c0_31, %c0_32, %c0_33] : memref<1x1x3x128xf32, #tpu.memory_space<vmem>>, vector<1x1x3x128xf32>
    %68 = vector.shape_cast %67 : vector<1x1x3x128xf32> to vector<3x128xf32>
    %69 = vector.shape_cast %66 : vector<3x128xf32> to vector<1x1x3x128xf32>
    tpu.vector_store %arg5[%c0_30, %c0_31, %c0_32, %c0_33], %69 {strides = array<i32>} : memref<1x1x3x128xf32, #tpu.memory_space<vmem>>, vector<1x1x3x128xf32>,
    %c0_34 = arith.constant 0 : index
    %c0_35 = arith.constant 0 : index
    %c0_36 = arith.constant 0 : index
    %c0_37 = arith.constant 0 : index
    %70 = vector.load %arg6[%c0_34, %c0_35, %c0_36, %c0_37] : memref<1x1x3x128xf32, #tpu.memory_space<vmem>>, vector<1x1x3x128xf32>
    %71 = vector.shape_cast %70 : vector<1x1x3x128xf32> to vector<3x128xf32>
    %72 = tpu.concatenate %32, %45, %58 in 0 : vector<1x128xf32>, vector<1x128xf32>, vector<1x128xf32> -> vector<3x128xf32>
    %73 = arith.addf %71, %72 : vector<3x128xf32>
    %c0_38 = arith.constant 0 : index
    %c0_39 = arith.constant 0 : index
    %c0_40 = arith.constant 0 : index
    %c0_41 = arith.constant 0 : index
    %74 = vector.load %arg6[%c0_38, %c0_39, %c0_40, %c0_41] : memref<1x1x3x128xf32, #tpu.memory_space<vmem>>, vector<1x1x3x128xf32>
    %75 = vector.shape_cast %74 : vector<1x1x3x128xf32> to vector<3x128xf32>
    %76 = vector.shape_cast %73 : vector<3x128xf32> to vector<1x1x3x128xf32>
    tpu.vector_store %arg6[%c0_38, %c0_39, %c0_40, %c0_41], %76 {strides = array<i32>} : memref<1x1x3x128xf32, #tpu.memory_space<vmem>>, vector<1x1x3x128xf32>,
    %c0_42 = arith.constant 0 : index
    %c0_43 = arith.constant 0 : index
    %c0_44 = arith.constant 0 : index
    %c0_45 = arith.constant 0 : index
    %77 = vector.load %arg7[%c0_42, %c0_43, %c0_44, %c0_45] : memref<1x1x3x128xf32, #tpu.memory_space<vmem>>, vector<1x1x3x128xf32>
    %78 = vector.shape_cast %77 : vector<1x1x3x128xf32> to vector<3x128xf32>
    %79 = tpu.concatenate %36, %49, %62 in 0 : vector<1x128xf32>, vector<1x128xf32>, vector<1x128xf32> -> vector<3x128xf32>
    %80 = arith.addf %78, %79 : vector<3x128xf32>
    %c0_46 = arith.constant 0 : index
    %c0_47 = arith.constant 0 : index
    %c0_48 = arith.constant 0 : index
    %c0_49 = arith.constant 0 : index
    %81 = vector.load %arg7[%c0_46, %c0_47, %c0_48, %c0_49] : memref<1x1x3x128xf32, #tpu.memory_space<vmem>>, vector<1x1x3x128xf32>
    %82 = vector.shape_cast %81 : vector<1x1x3x128xf32> to vector<3x128xf32>
    %83 = vector.shape_cast %80 : vector<3x128xf32> to vector<1x1x3x128xf32>
    tpu.vector_store %arg7[%c0_46, %c0_47, %c0_48, %c0_49], %83 {strides = array<i32>} : memref<1x1x3x128xf32, #tpu.memory_space<vmem>>, vector<1x1x3x128xf32>,
    return
  }
  func.func @transform_0(%arg0: i32, %arg1: i32, %arg2: i32) -> (i32, i32, i32, i32) {
    %c1_i32 = arith.constant 1 : i32
    %0 = arith.muli %arg1, %c1_i32 : i32
    %1 = arith.addi %0, %arg2 : i32
    %c0_i32 = arith.constant 0 : i32
    %c0_i32_0 = arith.constant 0 : i32
    %c0_i32_1 = arith.constant 0 : i32
    return %arg0, %c0_i32, %1, %c0_i32_0 : i32, i32, i32, i32
  }
  func.func @transform_1(%arg0: i32, %arg1: i32, %arg2: i32) -> (i32, i32, i32) {
    %c1_i32 = arith.constant 1 : i32
    %0 = arith.muli %arg1, %c1_i32 : i32
    %1 = arith.addi %0, %arg2 : i32
    %c0_i32 = arith.constant 0 : i32
    %c0_i32_0 = arith.constant 0 : i32
    return %arg0, %1, %c0_i32 : i32, i32, i32
  }
  func.func @transform_2(%arg0: i32, %arg1: i32, %arg2: i32) -> (i32, i32, i32, i32) {
    %c0_i32 = arith.constant 0 : i32
    %c0_i32_0 = arith.constant 0 : i32
    %c0_i32_1 = arith.constant 0 : i32
    return %arg0, %arg1, %c0_i32, %c0_i32_0 : i32, i32, i32, i32
  }
  func.func @transform_3(%arg0: i32, %arg1: i32, %arg2: i32) -> (i32, i32, i32, i32) {
    %c0_i32 = arith.constant 0 : i32
    %c0_i32_0 = arith.constant 0 : i32
    %c0_i32_1 = arith.constant 0 : i32
    return %arg0, %arg1, %c0_i32, %c0_i32_0 : i32, i32, i32, i32
  }
  func.func @transform_4(%arg0: i32, %arg1: i32, %arg2: i32) -> (i32, i32, i32, i32) {
    %c0_i32 = arith.constant 0 : i32
    %c0_i32_0 = arith.constant 0 : i32
    %c0_i32_1 = arith.constant 0 : i32
    return %arg0, %arg1, %c0_i32, %c0_i32_0 : i32, i32, i32, i32
  }
}

</mosaic_0001>

<bundles_post_ra>
// kernel: tpu_custom_call.1
= control target key start
LH: loop header
LB: loop body
LE: loop exit
PB: predicated region body
PF: predicated region fallthrough
CT: control target
= control target key end

     0   :  { %10 = vsyncpa [#allocation3], 0  ;;  %s997_s0 = inlined_call_operand.hbm [shape: f32[2,3,4,128], index: 0, kind: input, shape index: {}]   ;;  %s998_s1 = inlined_call_operand.vmem [shape: s8[2,4,128], index: 1, kind: input, shape index: {}]   ;;  %s999_s2 = inlined_call_operand.vmem [shape: f32[2,1,3,128], index: 2, kind: output, shape index: {0}]   ;;  %s1000_s3 = inlined_call_operand.vmem [shape: f32[2,1,3,128], index: 3, kind: output, shape index: {1}]   ;;  %s1001_s4 = inlined_call_operand.vmem [shape: f32[2,1,3,128], index: 4, kind: output, shape index: {2}]  }
   0x1   :  { %12 = vsyncpa [#allocation3 + $0x1], 0  ;;  %s823_s15 = smov 0   ;;  %s825_s16 = smov 0  }
   0x2   :  { %s827_s17 = smov 0   ;;  %s829_s18 = smov 0  }
   0x3   :  { %s831_s19 = smov 0   ;;  %s833_s20 = smov 0  }
   0x4 LB: > { %s627_s21 = sadd.s32 4294967295, %s792_s20   ;;  %s37_s22 = sadd.s32 1, %s788_s19  ;;  %s792_s20 = sphi %s833_s20, %s18_s20   ;;  %s788_s19 = sphi %s831_s19, %s1008_s19   ;;  %s784_s18 = sphi %s829_s18, %s1007_s18   ;;  %s780_s17 = sphi %s827_s17, %s1006_s17   ;;  %s776_s16 = sphi %s825_s16, %s1005_s16   ;;  %s772_s15 = sphi %s823_s15, %s1004_s15  }
   0x5   : > { %p39_p0 = scmp.ge.s32.totalorder %s37_s22, 2  ;;  %s48_s23 = sadd.s32 1, %s780_s17 }
   0x6   : > { %p55_p1 = scmp.ne.s32.totalorder %s780_s17, %s776_s16  ;;  %p56_p2 = scmp.eq.s32.totalorder %s792_s20, 0 }
   0x7   : > { %s1010_s22 = smov (%p39_p0, %s37_s22), 0  ;;  %p61_p4 = scmp.ne.s32.totalorder %s776_s16, %s772_s15 }
   0x8   : > { %p57_p3 = por %p56_p2, %p55_p1  ;;  %s43_s24 = ssub.s32 %s788_s19, %s1010_s22 }
   0x9   : > { %p62_p5 = scmp.eq.s32.totalorder %s627_s21, 0  ;;  %p46_p6 = scmp.eq.s32.totalorder %s43_s24, 0 }
   0xa   : > { %p652_p8 = scmp.lt.s32.totalorder %s792_s20, 2  ;;  %s199_s27 = sand.u32 1, %s780_s17  }
   0xb   : > { %p862_p7 = por %p62_p5, %p61_p4  ;;  %s644_s28 = smul.u32 192, %s788_s19 }
   0xc   : > { %s868_s26 = scalar_select %p46_p6, %s780_s17, %s48_s23  }
   0xd   : > { %s643_s29 = smul.u32 12, %s199_s27  ;;  %s875_s6 = scalar_lea.hbm %s997_s0, %s644_s28 }
   0xe   : > { %p877_p9 = pnand %p652_p8, %p57_p3  ;;  %s883_s10 = scalar_lea.sflag [#allocation3], %s199_s27 }
   0xf   : > { %s203_s8 = scalar_lea.vmem [#allocation2], %s643_s29  ;;  %s712_s11 = scalar_lea.hbm %s875_s6, 192 }
  0x10   : > { %s212_s9 = sshll.u32 %s203_s8, 4  ;;  %p713_p10 = scmp.ne.s32.totalorder %s875_s6, %s712_s11  ;;  %s881_s9 = int_to_ptr.vmem [resolvable:$true] %s212_s9 }
  0x11   : > { %p714_p11 = pneg %p877_p9  ;;  %s717_s14 = scalar_lea.hbm %s997_s0, 384 }
  0x12   : > { %p718_p0 = scmp.lt.u32.totalorder %s875_s6, %s997_s0  ;;  %p719_p1 = scmp.lt.u32.totalorder %s717_s14, %s712_s11 }
  0x13   : > { %p715_p12 = pnand %p714_p11, %p713_p10  ;;  %p721_p3 = scmp.lt.u32.totalorder %s712_s11, %s875_s6 }
  0x14   : > { %p720_p2 = por %p719_p1, %p718_p0 }
  0x15   : > { %p716_p13 = pneg %p715_p12 }
  0x16   : > { %p722_p4 = por %p721_p3, %p720_p2 }
  0x18   : > { %p723_p5 = pnand %p722_p4, %p716_p13 }
  0x1a   : > { %726 = shalt.err (!%p723_p5)
}
  0x1b   : > { %s727_s23 = scalar_lea.vmem %s881_s9, 192  ;;  %s794_s24 = smov [#allocation2]  }
  0x1c   : > { %p728_p6 = scmp.ne.s32.totalorder %s881_s9, %s727_s23  ;;  %s732_s27 = sshll.u32 %s794_s24, 4  ;;  %s733_s27 = int_to_ptr.vmem [resolvable:$false] %s732_s27 }
  0x1d   : > { %s734_s28 = scalar_lea.vmem %s733_s27, 384  ;;  %p735_p12 = scmp.lt.s32.totalorder %s881_s9, %s733_s27 }
  0x1e   : > { %p730_p8 = pnand %p728_p6, %p714_p11  ;;  %p736_p0 = scmp.lt.s32.totalorder %s734_s28, %s727_s23 }
  0x20   : > { %p731_p10 = pneg %p730_p8  ;;  %p737_p1 = por %p736_p0, %p735_p12 }
  0x22   : > { %p738_p2 = pnand %p737_p1, %p731_p10 }
  0x24   : > { %741 = shalt.err (!%p738_p2)
}
  0x25   : > { %s795_s29 = smov 64   ;;  %s796_s30 = smov 4  }
  0x26   : > { %651 = dma.hbm_to_vmem [thread:$0]  (!%p877_p9), %s875_s6, 192, %s881_s9, %s883_s10, %s795_s29, %s795_s29, %s796_s30  }
  0x27   : > { %p632_p11 = scmp.ge.s32.totalorder %s792_s20, 1  ;;  %p231_p13 = scmp.lt.s32.totalorder %s792_s20, 3 }
  0x29   : > { %p232_p3 = pnand %p632_p11, %p231_p13 }
  0x2a   : > { %s237_s5 = sand.u32 (!%p232_p3), 1, %s776_s16  }
  0x2b   : > { %235 = sbr.rel (%p232_p3) target bundleno = 111 (0x6f), region = 28  ;;  %s238_s11 = scalar_lea.sflag (!%p232_p3), [#allocation3], %s237_s5 }
  0x2c   : > { %s645_s8 = smul.u32 (!%p232_p3), 12, %s237_s5 }
  0x2e   : > { %s241_s12 = scalar_lea.vmem (!%p232_p3), [#allocation2], %s645_s8 }
  0x32   : > { %767 = dma.done.wait (%p862_p7), %s238_s11, 192  }
  0x33   : > { %769 = vsyncadd (%p862_p7), %s238_s11, 4294967104  ;;  %p291_p4 = scmp.lt.s32.totalorder %s784_s18, 1  ;;  %v797_v0 = vmov 0.0   ;;  %v328_v2 = vld [vmem:[%s241_s12] sm:$0xf]  ;;  %vm350_vm0 = vcmask 1043456  }
  0x34   : > { %v636_v3 = vld [vmem:[%s241_s12 + $0x4] sm:$0xf]  ;;  %v637_v5 = vld [vmem:[%s241_s12 + $0x8] sm:$0xf]  ;;  %vm428_vm4 = vcmask 1040384   ;;  %vm430_vm5 = vcmask 1041408  }
  0x35   : > { %s1012_s18 = smov (!%p291_p4, %s784_s18), 1  ;;  %v333_v6 = vmax.f32 %v328_v2, %v636_v3 }
  0x36   : > { %s296_s9 = scalar_lea.vmem %s998_s1, %s1012_s18  ;;  %s633_s10 = sshll.u32 %s1012_s18, 2 }
  0x37   : > { %s926_s15 = scalar_lea.vmem %s999_s2, %s633_s10  ;;  %s931_s25 = scalar_lea.vmem %s1000_s3, %s633_s10  ;;  %v326_v1 = vld [vmem:[%s296_s9] sm:$0x1]  ;;  %v334_v7 = vmax.f32 %v333_v6, %v637_v5 }
  0x38   : > { %323 = vst [vmem:[%s926_s15] sm:$0x7] %v797_v0  ;;  %324 = vst [vmem:[%s931_s25] sm:$0x7] %v797_v0  ;;  %s938_s28 = scalar_lea.vmem %s1001_s4, %s633_s10  ;;  %v941_v4 = vunpack.c.0.s8 %v326_v1 }
  0x39   : > { %325 = vst [vmem:[%s938_s28] sm:$0x7] %v797_v0  ;;  %v335_v11 = vsub.f32 %v328_v2, %v334_v7  ;;  %v338_v12 = vsub.f32 %v636_v3, %v334_v7  ;;  %v341_v13 = vsub.f32 %v637_v5, %v334_v7 }
  0x3a   : > { %vm349_vm1 = vcmp.eq.s32.totalorder %v941_v4, 0  ;;  %vm376_vm2 = vcmp.eq.s32.totalorder %v941_v4, 1  ;;  %vm402_vm3 = vcmp.eq.s32.totalorder %v941_v4, 2 }
  0x3b   : > { %v638_v8 = vsel %vm349_vm1, 1.0, %v797_v0  ;;  %v639_v9 = vsel %vm376_vm2, 1.0, %v797_v0  ;;  %v640_v10 = vsel %vm402_vm3, 1.0, %v797_v0  ;;  %v336_v18 = vmul.f32 1.442695, %v335_v11 }
  0x3c   : > { %v360_v14 = vsel %vm350_vm0, %v638_v8, 0.0  ;;  %v386_v16 = vsel %vm350_vm0, %v639_v9, 0.0  ;;  %v412_v17 = vsel %vm350_vm0, %v640_v10, 0.0  ;;  %v339_v19 = vmul.f32 1.442695, %v338_v12 }
  0x3d   : > { %v361_v15 = vrot.slane %v360_v14, 4  ;;  %v342_v20 = vmul.f32 1.442695, %v341_v13  ;;  %v387_v21 = vrot.slane %v386_v16, 4  ;;  %v413_v23 = vrot.slane %v412_v17, 4 }
  0x3e   : > { %704 = vpow2.f32 %v336_v18 }
  0x3f   : > { %v362_v22 = vadd.f32 %v361_v15, %v360_v14  ;;  %706 = vpow2.f32 %v339_v19  ;;  %v388_v25 = vadd.f32 %v387_v21, %v386_v16  ;;  %v414_v26 = vadd.f32 %v413_v23, %v412_v17  ;;  %v434_v39 = vld [vmem:[%s931_s25] sm:$0x7] }
  0x40   : > { %708 = vpow2.f32 %v342_v20 }
  0x41   : > { %v363_v24 = vrot.slane %v362_v22, 2  ;;  %v389_v28 = vrot.slane %v388_v25, 2  ;;  %v415_v29 = vrot.slane %v414_v26, 2 }
  0x43   : > { %v364_v27 = vadd.f32 %v363_v24, %v362_v22  ;;  %v390_v31 = vadd.f32 %v389_v28, %v388_v25  ;;  %v416_v32 = vadd.f32 %v415_v29, %v414_v26 }
  0x45   : > { %v365_v30 = vrot.slane %v364_v27, 1  ;;  %v391_v34 = vrot.slane %v390_v31, 1  ;;  %v417_v35 = vrot.slane %v416_v32, 1 }
  0x47   : > { %v366_v33 = vadd.f32 %v365_v30, %v364_v27  ;;  %v392_v36 = vadd.f32 %v391_v34, %v390_v31  ;;  %v418_v37 = vadd.f32 %v417_v35, %v416_v32  ;;  %v427_v31 = vld [vmem:[%s926_s15] sm:$0x7] }
  0x48   : > { %v705_v38 = vpop.eup %704  ;;  %v439_v34 = vld [vmem:[%s938_s28] sm:$0x7] }
  0x49   : > { %v707_v40 = vpop.eup %706  ;;  %v435_v41 = vsel %vm428_vm4, %v366_v33, %v392_v36 }
  0x4a   : > { %v709_v42 = vpop.eup %708  ;;  %v344_v43 = vadd.f32 %v707_v40, %v705_v38  ;;  %v436_v44 = vsel %vm430_vm5, %v435_v41, %v418_v37 }
  0x4b   : > { %v437_v45 = vadd.f32 %v436_v44, %v434_v39 }
  0x4c   : > { %v345_v46 = vadd.f32 %v709_v42, %v344_v43 }
  0x4d   : > { %438 = vst [vmem:[%s931_s25] sm:$0x7] %v437_v45 }
  0x4e   : > { %710 = vrcp.f32 %v345_v46 }
  0x58   : > { %v711_v47 = vpop.eup %710 }
  0x59   : > { %v348_v48 = vmul.f32 %v711_v47, %v705_v38  ;;  %v375_v49 = vmul.f32 %v711_v47, %v707_v40  ;;  %v401_v50 = vmul.f32 %v711_v47, %v709_v42 }
  0x5b   : > { %v351_v51 = vsel %vm350_vm0, %v348_v48, 0.0  ;;  %v367_v52 = vsel %vm349_vm1, %v348_v48, 0.0  ;;  %v377_v53 = vsel %vm350_vm0, %v375_v49, 0.0  ;;  %v393_v54 = vsel %vm376_vm2, %v375_v49, 0.0 }
  0x5c   : > { %v352_v55 = vrot.slane %v351_v51, 4  ;;  %v368_v56 = vsel %vm350_vm0, %v367_v52, 0.0  ;;  %v378_v57 = vrot.slane %v377_v53, 4  ;;  %v394_v58 = vsel %vm350_vm0, %v393_v54, 0.0 }
  0x5d   : > { %v369_v59 = vrot.slane %v368_v56, 4  ;;  %v395_v60 = vrot.slane %v394_v58, 4  ;;  %v403_v61 = vsel %vm350_vm0, %v401_v50, 0.0  ;;  %v419_v62 = vsel %vm402_vm3, %v401_v50, 0.0 }
  0x5e   : > { %v353_v63 = vadd.f32 %v352_v55, %v351_v51  ;;  %v379_v0 = vadd.f32 %v378_v57, %v377_v53  ;;  %v404_v1 = vrot.slane %v403_v61, 4  ;;  %v420_v2 = vsel %vm350_vm0, %v419_v62, 0.0 }
  0x5f   : > { %v370_v3 = vadd.f32 %v369_v59, %v368_v56  ;;  %v396_v5 = vadd.f32 %v395_v60, %v394_v58  ;;  %v421_v6 = vrot.slane %v420_v2, 4 }
  0x60   : > { %v354_v7 = vrot.slane %v353_v63, 2  ;;  %v380_v8 = vrot.slane %v379_v0, 2  ;;  %v405_v9 = vadd.f32 %v404_v1, %v403_v61 }
  0x61   : > { %v371_v10 = vrot.slane %v370_v3, 2  ;;  %v397_v11 = vrot.slane %v396_v5, 2  ;;  %v422_v12 = vadd.f32 %v421_v6, %v420_v2 }
  0x62   : > { %v355_v13 = vadd.f32 %v354_v7, %v353_v63  ;;  %v381_v14 = vadd.f32 %v380_v8, %v379_v0  ;;  %v406_v15 = vrot.slane %v405_v9, 2 }
  0x63   : > { %v372_v16 = vadd.f32 %v371_v10, %v370_v3  ;;  %v398_v4 = vadd.f32 %v397_v11, %v396_v5  ;;  %v423_v17 = vrot.slane %v422_v12, 2 }
  0x64   : > { %v356_v18 = vrot.slane %v355_v13, 1  ;;  %v382_v19 = vrot.slane %v381_v14, 1  ;;  %v407_v20 = vadd.f32 %v406_v15, %v405_v9 }
  0x65   : > { %v373_v21 = vrot.slane %v372_v16, 1  ;;  %v399_v22 = vrot.slane %v398_v4, 1  ;;  %v424_v23 = vadd.f32 %v423_v17, %v422_v12 }
  0x66   : > { %v357_v24 = vadd.f32 %v356_v18, %v355_v13  ;;  %v383_v25 = vadd.f32 %v382_v19, %v381_v14  ;;  %v408_v26 = vrot.slane %v407_v20, 1 }
  0x67   : > { %v374_v27 = vadd.f32 %v373_v21, %v372_v16  ;;  %v400_v28 = vadd.f32 %v399_v22, %v398_v4  ;;  %v425_v29 = vrot.slane %v424_v23, 1 }
  0x68   : > { %v409_v30 = vadd.f32 %v408_v26, %v407_v20  ;;  %v429_v32 = vsel %vm428_vm4, %v357_v24, %v383_v25 }
  0x69   : > { %v426_v33 = vadd.f32 %v425_v29, %v424_v23  ;;  %v440_v35 = vsel %vm428_vm4, %v374_v27, %v400_v28 }
  0x6a   : > { %v431_v36 = vsel %vm430_vm5, %v429_v32, %v409_v30 }
  0x6b   : > { %v432_v37 = vadd.f32 %v431_v36, %v427_v31  ;;  %v441_v38 = vsel %vm430_vm5, %v440_v35, %v426_v33 }
  0x6c   : > { %v442_v39 = vadd.f32 %v441_v38, %v439_v34 }
  0x6d   : > { %433 = vst [vmem:[%s926_s15] sm:$0x7] %v432_v37 }
  0x6e   : > { %443 = vst [vmem:[%s938_s28] sm:$0x7] %v442_v39 }
  0x6f PF: > { %s18_s20 = sadd.s32 1, %s792_s20   ;;  %s1004_s15 = smov %s776_s16 }
  0x70   : > { %p15_p7 = scmp.ge.s32.totalorder %s18_s20, 4   ;;  %s1005_s16 = smov %s780_s17 }
  0x71   : > { %s1006_s17 = smov %s868_s26  ;;  %s1007_s18 = smov %s788_s19 }
  0x72   : > { %s1008_s19 = smov %s1010_s22  ;;  %17 = sbr.rel (!%p15_p7) target bundleno = 4 (0x4), region = 101 }
  0x79   :  { %509 = vsyncpa [#allocation3], 1 }
  0x7a   :  { %511 = vsyncpa [#allocation3 + $0x1], 1 }

</bundles_post_ra>
